<compile_context>
chip_gen: v6e
topology: v6e:2x2x1
jax: 0.10.0
libtpu: 0.0.40
codegen_flags: <defaults>
</compile_context>

<pallas_src>
import functools

import jax
import jax.numpy as jnp
from jax import lax
from jax.experimental import pallas as pl
from jax.experimental.pallas import tpu as pltpu


def _cbow_kernel(idx_ref, emb_ref, w_ref, b_ref, out_ref,
                 mean_ref, m_sc, l_sc, *, context_size):
    b = pl.program_id(0)          # batch tile
    v = pl.program_id(1)          # vocab tile
    nv = pl.num_programs(1)

    TB, E = mean_ref.shape        # batch tile rows, embedding width
    TV = w_ref.shape[1]           # vocab tile width (multiple of 128)

    # ---- once per batch tile: gather + mean embedding, init LSE stats ----
    @pl.when(v == 0)
    def _gather_and_init():
        m_sc[...] = jnp.full_like(m_sc, -jnp.inf)
        l_sc[...] = jnp.zeros_like(l_sc)

        base_row = b * TB
        inv_c = jnp.float32(1.0 / context_size)

        def body(r, carry):
            acc = jnp.zeros((1, E), jnp.float32)
            for c in range(context_size):                    # C tiny, static unroll
                tok = idx_ref[(base_row + r) * context_size + c]   # SMEM scalar
                acc = acc + emb_ref[pl.ds(tok, 1), :].astype(jnp.float32)
            mean_ref[pl.ds(r, 1), :] = acc * inv_c
            return carry

        lax.fori_loop(0, TB, body, 0)

    # ---- every vocab tile: fc1 tile + online log-softmax stats ----
    mean_emb = mean_ref[...].astype(w_ref.dtype)             # (TB, E)
    logits = jnp.dot(mean_emb, w_ref[...],
                     preferred_element_type=jnp.float32) + b_ref[...]   # (TB, TV)

    m_prev = m_sc[...]
    m_new = jnp.maximum(m_prev, jnp.max(logits, axis=1, keepdims=True))
    l_sc[...] = (l_sc[...] * jnp.exp(m_prev - m_new)
                 + jnp.sum(jnp.exp(logits - m_new), axis=1, keepdims=True))
    m_sc[...] = m_new

    # Stage raw logits into the resident (lane-dense) output block.
    start = pl.multiple_of(v * TV, 128)
    out_ref[:, pl.ds(start, TV)] = logits

    # ---- last vocab tile: subtract logsumexp ----
    @pl.when(v == nv - 1)
    def _finalize():
        lse = m_sc[...] + jnp.log(l_sc[...])                 # (TB, 1)
        out_ref[...] = out_ref[...] - lse


def _round_up(x, m):
    return ((x + m - 1) // m) * m


def _vocab_tile(vp, preferred):
    """Largest multiple of 128 that divides vp and is <= preferred."""
    if vp <= preferred:
        return vp
    t = max((preferred // 128) * 128, 128)
    while vp % t != 0:
        t -= 128
    return t


def _batch_tile(batch, vp, preferred, out_budget_bytes):
    """Batch tile: divides B, multiple of 8 (or == B), resident out fits budget."""
    cap = max(1, out_budget_bytes // (2 * vp * 4))   # double-buffered f32 out block
    hi = max(1, min(batch, preferred, cap))
    for t in range(hi, 0, -1):
        if batch % t == 0 and (t % 8 == 0 or t == batch):
            return t
    return batch


def cbow_forward(x_idx, emb_table, fc_w, fc_b, *, tb=128, tv=1024,
                 out_vmem_budget=24 * 1024 * 1024):
    """x_idx: (B, C) int; emb_table: (V, E); fc_w: (V, E); fc_b: (V,)."""
    B, C = x_idx.shape
    V, E = emb_table.shape
    assert fc_w.shape == (V, E) and fc_b.shape == (V,)

    # One-time host transpose to (E, V): lane-dense, native MXU (K, N) layout.
    w_t = jnp.asarray(fc_w).T
    bias = jnp.asarray(fc_b)

    # Pad vocab to a multiple of 128 so every tile / store is lane-dense.
    # Padded columns: zero weights, very negative bias -> exp underflows to 0,
    # the log-softmax over the real columns is unaffected; sliced off below.
    Vp = _round_up(V, 128)
    if Vp != V:
        w_t = jnp.pad(w_t, ((0, 0), (0, Vp - V)))
        bias = jnp.pad(bias, (0, Vp - V), constant_values=-1e30)
    bias2 = bias.reshape(1, Vp)

    TV = _vocab_tile(Vp, tv)
    TB = _batch_tile(B, Vp, tb, out_vmem_budget)
    nb, nv = B // TB, Vp // TV

    idx_flat = jnp.asarray(x_idx, jnp.int32).reshape(B * C)   # 1-D SMEM-friendly

    kernel = functools.partial(_cbow_kernel, context_size=C)

    grid_spec = pltpu.PrefetchScalarGridSpec(
        num_scalar_prefetch=1,                       # x_idx -> SMEM
        grid=(nb, nv),
        in_specs=[
            # Embedding table: fully resident in VMEM (constant block index ->
            # DMA'd once for the whole kernel, never re-fetched).
            pl.BlockSpec((V, E), lambda b, v, idx: (0, 0)),
            # fc1 weight, pre-transposed to (E, Vp): walk vocab tiles.
            pl.BlockSpec((E, TV), lambda b, v, idx: (0, v)),
            # fc1 bias (1, Vp): walk vocab tiles.
            pl.BlockSpec((1, TV), lambda b, v, idx: (0, v)),
        ],
        # Output block resident across the vocab sweep (accumulator pattern),
        # written back once per batch tile; Vp is a multiple of 128.
        out_specs=pl.BlockSpec((TB, Vp), lambda b, v, idx: (b, 0)),
        scratch_shapes=[
            pltpu.VMEM((TB, E), jnp.float32),   # gathered mean embeddings
            pltpu.VMEM((TB, 1), jnp.float32),   # running max
            pltpu.VMEM((TB, 1), jnp.float32),   # running sum(exp)
        ],
    )

    out = pl.pallas_call(
        kernel,
        out_shape=jax.ShapeDtypeStruct((B, Vp), jnp.float32),
        grid_spec=grid_spec,
        compiler_params=pltpu.CompilerParams(
            # batch tiles independent -> megacore-parallel; vocab axis carries
            # the LSE accumulators and the resident output -> arbitrary.
            dimension_semantics=("parallel", "arbitrary"),
            vmem_limit_bytes=64 * 1024 * 1024,
        ),
    )(idx_flat, emb_table, w_t, bias2)

    return out[:, :V][:, None, :]       # (B, 1, V)  ==  .unsqueeze(1)


def cbow_reference(x_idx, emb_table, fc_w, fc_b):
    emb = emb_table[x_idx]                                # (B, C, E)
    mean = emb.sum(axis=1) / emb.shape[1]                 # (B, E)
    logits = mean @ fc_w.T + fc_b                         # (B, V)
    return jax.nn.log_softmax(logits, axis=1)[:, None, :]


def _make_params(key, vocab, embed, padding_idx=0):
    k_emb, k_w, k_b = jax.random.split(key, 3)
    # nn.Embedding: N(0,1) init, padding_idx row zeroed.
    emb_table = jax.random.normal(k_emb, (vocab, embed), dtype=jnp.float32)
    emb_table = emb_table.at[padding_idx].set(0.0)
    # nn.Linear(embed -> vocab): uniform(-1/sqrt(E), 1/sqrt(E)) init.
    bound = 1.0 / (embed ** 0.5)
    fc_w = jax.random.uniform(k_w, (vocab, embed), jnp.float32, -bound, bound)
    fc_b = jax.random.uniform(k_b, (vocab,), jnp.float32, -bound, bound)
    return emb_table, fc_w, fc_b


if __name__ == "__main__":
    key = jax.random.PRNGKey(0)
    k1, k2, k_idx1, k_idx2 = jax.random.split(key, 4)

    # Case 1: small, divisible shapes (single vocab tile, single batch tile).
    V1, E1, B1, C1 = 128, 32, 8, 4
    emb1, w1, b1 = _make_params(k1, V1, E1)
    x1 = jax.random.randint(k_idx1, (B1, C1), 0, V1, dtype=jnp.int32)
    out1 = jax.block_until_ready(cbow_forward(x1, emb1, w1, b1))
    ref1 = cbow_reference(x1, emb1, w1, b1)
    assert out1.shape == (B1, 1, V1), out1.shape
    assert jnp.allclose(out1, ref1, atol=1e-4, rtol=1e-4), "case1 mismatch"

    # Case 2: non-divisible vocab (padding path), multiple vocab tiles
    # (online log-softmax across tiles) and multiple batch tiles.
    V2, E2, B2, C2 = 200, 32, 16, 5
    emb2, w2, b2 = _make_params(k2, V2, E2)
    x2 = jax.random.randint(k_idx2, (B2, C2), 0, V2, dtype=jnp.int32)
    out2 = jax.block_until_ready(cbow_forward(x2, emb2, w2, b2, tb=8, tv=128))
    ref2 = cbow_reference(x2, emb2, w2, b2)
    assert out2.shape == (B2, 1, V2), out2.shape
    assert jnp.allclose(out2, ref2, atol=1e-4, rtol=1e-4), "case2 mismatch"

    print("KERNEL_OK")
</pallas_src>

<mosaic_0001>
module attributes {stable_mosaic.version = 11 : i64} {
  func.func @_cbow_kernel(%arg0: i32, %arg1: i32, %arg2: memref<32xi32, #tpu.memory_space<smem>>, %arg3: memref<128x32xf32, #tpu.memory_space<vmem>>, %arg4: memref<32x128xf32, #tpu.memory_space<vmem>>, %arg5: memref<1x128xf32, #tpu.memory_space<vmem>>, %arg6: memref<8x128xf32, #tpu.memory_space<vmem>>, %arg7: memref<8x32xf32, #tpu.memory_space<vmem>>, %arg8: memref<8x1xf32, #tpu.memory_space<vmem>>, %arg9: memref<8x1xf32, #tpu.memory_space<vmem>>) attributes {dimension_semantics = [#tpu.dimension_semantics<parallel>, #tpu.dimension_semantics<arbitrary>], iteration_bounds = array<i64: 1, 1>, scalar_prefetch = 1 : i64, scratch_operands = 3 : i64, tpu.core_type = #tpu.core_type<tc>, window_params = [{pipeline_mode = #tpu.pipeline_mode<synchronous>, transform_indices = @transform_0, window_bounds = array<i64: 128, 32>}, {transform_indices = @transform_1, window_bounds = array<i64: 32, 128>}, {transform_indices = @transform_2, window_bounds = array<i64: 1, 128>}, {transform_indices = @transform_3, window_bounds = array<i64: 8, 128>}]} {
    %c0_i32 = arith.constant 0 : i32
    %0 = arith.cmpi eq, %arg1, %c0_i32 : i32
    %1 = arith.extui %0 : i1 to i32
    %c0_i32_0 = arith.constant 0 : i32
    %2 = arith.cmpi ne, %1, %c0_i32_0 : i32
    scf.if %2 {
      %cst_19 = arith.constant 0xFF800000 : f32
      %32 = vector.broadcast %cst_19 : f32 to vector<8x1xf32>
      %c0_20 = arith.constant 0 : index
      %c0_21 = arith.constant 0 : index
      %33 = vector.load %arg8[%c0_20, %c0_21] : memref<8x1xf32, #tpu.memory_space<vmem>>, vector<8x1xf32>
      tpu.vector_store %arg8[%c0_20, %c0_21], %32 {strides = array<i32>} : memref<8x1xf32, #tpu.memory_space<vmem>>, vector<8x1xf32>,
      %cst_22 = arith.constant 0.000000e+00 : f32
      %34 = vector.broadcast %cst_22 : f32 to vector<8x1xf32>
      %c0_23 = arith.constant 0 : index
      %c0_24 = arith.constant 0 : index
      %35 = vector.load %arg9[%c0_23, %c0_24] : memref<8x1xf32, #tpu.memory_space<vmem>>, vector<8x1xf32>
      tpu.vector_store %arg9[%c0_23, %c0_24], %34 {strides = array<i32>} : memref<8x1xf32, #tpu.memory_space<vmem>>, vector<8x1xf32>,
      %c8_i32 = arith.constant 8 : i32
      %36 = arith.muli %arg0, %c8_i32 : i32
      %cst_25 = arith.constant 2.500000e-01 : f32
      %c0_i32_26 = arith.constant 0 : i32
      %c8_i32_27 = arith.constant 8 : i32
      %37 = arith.addi %c0_i32_26, %c8_i32_27 : i32
      %c1_i32 = arith.constant 1 : i32
      scf.for %arg10 = %c0_i32_26 to %37 step %c1_i32  : i32 {
        %cst_29 = arith.constant 0.000000e+00 : f32
        %38 = vector.broadcast %cst_29 : f32 to vector<1x32xf32>
        %39 = arith.addi %36, %arg10 : i32
        %c4_i32 = arith.constant 4 : i32
        %40 = arith.muli %39, %c4_i32 : i32
        %c0_i32_30 = arith.constant 0 : i32
        %41 = arith.addi %40, %c0_i32_30 : i32
        %42 = arith.index_cast %41 : i32 to index
        %43 = memref.load %arg2[%42] : memref<32xi32, #tpu.memory_space<smem>>
        %44 = arith.index_cast %43 : i32 to index
        %c0_31 = arith.constant 0 : index
        %45 = vector.load %arg3[%44, %c0_31] : memref<128x32xf32, #tpu.memory_space<vmem>>, vector<1x32xf32>
        %46 = arith.addf %38, %45 : vector<1x32xf32>
        %47 = arith.addi %36, %arg10 : i32
        %c4_i32_32 = arith.constant 4 : i32
        %48 = arith.muli %47, %c4_i32_32 : i32
        %c1_i32_33 = arith.constant 1 : i32
        %49 = arith.addi %48, %c1_i32_33 : i32
        %50 = arith.index_cast %49 : i32 to index
        %51 = memref.load %arg2[%50] : memref<32xi32, #tpu.memory_space<smem>>
        %52 = arith.index_cast %51 : i32 to index
        %c0_34 = arith.constant 0 : index
        %53 = vector.load %arg3[%52, %c0_34] : memref<128x32xf32, #tpu.memory_space<vmem>>, vector<1x32xf32>
        %54 = arith.addf %46, %53 : vector<1x32xf32>
        %55 = arith.addi %36, %arg10 : i32
        %c4_i32_35 = arith.constant 4 : i32
        %56 = arith.muli %55, %c4_i32_35 : i32
        %c2_i32 = arith.constant 2 : i32
        %57 = arith.addi %56, %c2_i32 : i32
        %58 = arith.index_cast %57 : i32 to index
        %59 = memref.load %arg2[%58] : memref<32xi32, #tpu.memory_space<smem>>
        %60 = arith.index_cast %59 : i32 to index
        %c0_36 = arith.constant 0 : index
        %61 = vector.load %arg3[%60, %c0_36] : memref<128x32xf32, #tpu.memory_space<vmem>>, vector<1x32xf32>
        %62 = arith.addf %54, %61 : vector<1x32xf32>
        %63 = arith.addi %36, %arg10 : i32
        %c4_i32_37 = arith.constant 4 : i32
        %64 = arith.muli %63, %c4_i32_37 : i32
        %c3_i32 = arith.constant 3 : i32
        %65 = arith.addi %64, %c3_i32 : i32
        %66 = arith.index_cast %65 : i32 to index
        %67 = memref.load %arg2[%66] : memref<32xi32, #tpu.memory_space<smem>>
        %68 = arith.index_cast %67 : i32 to index
        %c0_38 = arith.constant 0 : index
        %69 = vector.load %arg3[%68, %c0_38] : memref<128x32xf32, #tpu.memory_space<vmem>>, vector<1x32xf32>
        %70 = arith.addf %62, %69 : vector<1x32xf32>
        %71 = vector.broadcast %cst_25 : f32 to vector<1x32xf32>
        %72 = arith.mulf %70, %71 : vector<1x32xf32>
        %73 = arith.index_cast %arg10 : i32 to index
        %c0_39 = arith.constant 0 : index
        %74 = vector.load %arg7[%73, %c0_39] : memref<8x32xf32, #tpu.memory_space<vmem>>, vector<1x32xf32>
        tpu.vector_store %arg7[%73, %c0_39], %72 {strides = array<i32>} : memref<8x32xf32, #tpu.memory_space<vmem>>, vector<1x32xf32>,
      }
      %c8_i32_28 = arith.constant 8 : i32
    } else {
    }
    %c0 = arith.constant 0 : index
    %c0_1 = arith.constant 0 : index
    %3 = vector.load %arg7[%c0, %c0_1] : memref<8x32xf32, #tpu.memory_space<vmem>>, vector<8x32xf32>
    %c0_2 = arith.constant 0 : index
    %c0_3 = arith.constant 0 : index
    %4 = vector.load %arg4[%c0_2, %c0_3] : memref<32x128xf32, #tpu.memory_space<vmem>>, vector<32x128xf32>
    %cst = arith.constant dense<0.000000e+00> : vector<8x128xf32>
    %5 = tpu.matmul %3, %4, %cst {dimension_numbers = #tpu.dot_dimension_numbers<[1], [0], [0], [1], [0, 0, 1, 1], [], []>} : vector<8x32xf32>, vector<32x128xf32>, vector<8x128xf32> -> vector<8x128xf32>
    %c0_4 = arith.constant 0 : index
    %c0_5 = arith.constant 0 : index
    %6 = vector.load %arg5[%c0_4, %c0_5] : memref<1x128xf32, #tpu.memory_space<vmem>>, vector<1x128xf32>
    %7 = vector.broadcast %6 : vector<1x128xf32> to vector<8x128xf32>
    %8 = arith.addf %5, %7 : vector<8x128xf32>
    %c0_6 = arith.constant 0 : index
    %c0_7 = arith.constant 0 : index
    %9 = vector.load %arg8[%c0_6, %c0_7] : memref<8x1xf32, #tpu.memory_space<vmem>>, vector<8x1xf32>
    %cst_8 = arith.constant dense<0xFF800000> : vector<8xf32>
    %10 = vector.multi_reduction <maximumf>, %8, %cst_8 [1] : vector<8x128xf32> to vector<8xf32>
    %11 = vector.shape_cast %10 : vector<8xf32> to vector<8x1xf32>
    %12 = arith.maximumf %9, %11 : vector<8x1xf32>
    %c0_9 = arith.constant 0 : index
    %c0_10 = arith.constant 0 : index
    %13 = vector.load %arg9[%c0_9, %c0_10] : memref<8x1xf32, #tpu.memory_space<vmem>>, vector<8x1xf32>
    %14 = arith.subf %9, %12 : vector<8x1xf32>
    %15 = math.exp %14 : vector<8x1xf32>
    %16 = arith.mulf %13, %15 : vector<8x1xf32>
    %17 = vector.broadcast %12 : vector<8x1xf32> to vector<8x128xf32>
    %18 = arith.subf %8, %17 : vector<8x128xf32>
    %19 = math.exp %18 : vector<8x128xf32>
    %cst_11 = arith.constant dense<0.000000e+00> : vector<8xf32>
    %20 = vector.multi_reduction <add>, %19, %cst_11 [1] : vector<8x128xf32> to vector<8xf32>
    %21 = vector.shape_cast %20 : vector<8xf32> to vector<8x1xf32>
    %22 = arith.addf %16, %21 : vector<8x1xf32>
    %c0_12 = arith.constant 0 : index
    %c0_13 = arith.constant 0 : index
    %23 = vector.load %arg9[%c0_12, %c0_13] : memref<8x1xf32, #tpu.memory_space<vmem>>, vector<8x1xf32>
    tpu.vector_store %arg9[%c0_12, %c0_13], %22 {strides = array<i32>} : memref<8x1xf32, #tpu.memory_space<vmem>>, vector<8x1xf32>,
    %c0_14 = arith.constant 0 : index
    %c0_15 = arith.constant 0 : index
    %24 = vector.load %arg8[%c0_14, %c0_15] : memref<8x1xf32, #tpu.memory_space<vmem>>, vector<8x1xf32>
    tpu.vector_store %arg8[%c0_14, %c0_15], %12 {strides = array<i32>} : memref<8x1xf32, #tpu.memory_space<vmem>>, vector<8x1xf32>,
    %c128_i32 = arith.constant 128 : i32
    %25 = arith.muli %arg1, %c128_i32 : i32
    %26 = tpu.assume_multiple %25, 128 : i32
    %c0_16 = arith.constant 0 : index
    %27 = arith.index_cast %26 : i32 to index
    %28 = vector.load %arg6[%c0_16, %27] : memref<8x128xf32, #tpu.memory_space<vmem>>, vector<8x128xf32>
    tpu.vector_store %arg6[%c0_16, %27], %8 {strides = array<i32>} : memref<8x128xf32, #tpu.memory_space<vmem>>, vector<8x128xf32>,
    %c0_i32_17 = arith.constant 0 : i32
    %29 = arith.cmpi eq, %arg1, %c0_i32_17 : i32
    %30 = arith.extui %29 : i1 to i32
    %c0_i32_18 = arith.constant 0 : i32
    %31 = arith.cmpi ne, %30, %c0_i32_18 : i32
    scf.if %31 {
      %c0_19 = arith.constant 0 : index
      %c0_20 = arith.constant 0 : index
      %32 = vector.load %arg8[%c0_19, %c0_20] : memref<8x1xf32, #tpu.memory_space<vmem>>, vector<8x1xf32>
      %c0_21 = arith.constant 0 : index
      %c0_22 = arith.constant 0 : index
      %33 = vector.load %arg9[%c0_21, %c0_22] : memref<8x1xf32, #tpu.memory_space<vmem>>, vector<8x1xf32>
      %34 = math.log %33 : vector<8x1xf32>
      %35 = arith.addf %32, %34 : vector<8x1xf32>
      %c0_23 = arith.constant 0 : index
      %c0_24 = arith.constant 0 : index
      %36 = vector.load %arg6[%c0_23, %c0_24] : memref<8x128xf32, #tpu.memory_space<vmem>>, vector<8x128xf32>
      %37 = vector.broadcast %35 : vector<8x1xf32> to vector<8x128xf32>
      %38 = arith.subf %36, %37 : vector<8x128xf32>
      %c0_25 = arith.constant 0 : index
      %c0_26 = arith.constant 0 : index
      %39 = vector.load %arg6[%c0_25, %c0_26] : memref<8x128xf32, #tpu.memory_space<vmem>>, vector<8x128xf32>
      tpu.vector_store %arg6[%c0_25, %c0_26], %38 {strides = array<i32>} : memref<8x128xf32, #tpu.memory_space<vmem>>, vector<8x128xf32>,
    } else {
    }
    return
  }
  func.func @transform_0(%arg0: i32, %arg1: i32, %arg2: memref<32xi32, #tpu.memory_space<smem>>) -> (i32, i32) {
    %c0_i32 = arith.constant 0 : i32
    %c0_i32_0 = arith.constant 0 : i32
    %c0_i32_1 = arith.constant 0 : i32
    return %c0_i32, %c0_i32_0 : i32, i32
  }
  func.func @transform_1(%arg0: i32, %arg1: i32, %arg2: memref<32xi32, #tpu.memory_space<smem>>) -> (i32, i32) {
    %c0_i32 = arith.constant 0 : i32
    %c0_i32_0 = arith.constant 0 : i32
    return %c0_i32, %arg1 : i32, i32
  }
  func.func @transform_2(%arg0: i32, %arg1: i32, %arg2: memref<32xi32, #tpu.memory_space<smem>>) -> (i32, i32) {
    %c0_i32 = arith.constant 0 : i32
    %c0_i32_0 = arith.constant 0 : i32
    return %c0_i32, %arg1 : i32, i32
  }
  func.func @transform_3(%arg0: i32, %arg1: i32, %arg2: memref<32xi32, #tpu.memory_space<smem>>) -> (i32, i32) {
    %c0_i32 = arith.constant 0 : i32
    %c0_i32_0 = arith.constant 0 : i32
    return %arg0, %c0_i32 : i32, i32
  }
}

</mosaic_0001>

<bundles_post_ra>
// kernel: tpu_custom_call.1
= control target key start
LH: loop header
LB: loop body
LE: loop exit
PB: predicated region body
PF: predicated region fallthrough
CT: control target
= control target key end

     0   :  { %s374_s0 = inlined_call_operand.vmem [shape: s32[32], index: 0, kind: input, shape index: {}]   ;;  %s375_s1 = inlined_call_operand.vmem [shape: f32[128,32], index: 1, kind: input, shape index: {}]   ;;  %s376_s2 = inlined_call_operand.vmem [shape: f32[32,128], index: 2, kind: input, shape index: {}]   ;;  %s377_s3 = inlined_call_operand.vmem [shape: f32[1,128], index: 3, kind: input, shape index: {}]   ;;  %s378_s4 = inlined_call_operand.hbm [shape: f32[8,128], index: 4, kind: output, shape index: {}]  }
   0x1   :  { %s9_s17 = sshll.u32 %s374_s0, 4  ;;  %s10_s17 = int_to_ptr.vmem [resolvable:$true] %s9_s17 }
   0x2   :  { %s257_s18 = scalar_lea.vmem %s10_s17, 16  ;;  %p262_p1 = scmp.lt.s32.totalorder %s10_s17, %s10_s17 }
   0x3   :  { %p258_p0 = scmp.ne.s32.totalorder %s10_s17, %s257_s18  ;;  %p263_p2 = scmp.lt.s32.totalorder %s257_s18, %s257_s18 }
   0x5   :  { %p264_p3 = por %p263_p2, %p262_p1 }
   0x7   :  { %p265_p4 = pnand %p264_p3, %p258_p0 }
   0x9   :  { %268 = shalt.err (!%p265_p4)  }
   0xa   :  { %s301_s19 = smov [#allocation6]  }
   0xb   :  { %12 = dma.vmem_to_smem %s10_s17, 16, %s301_s19, [#allocation5] }
   0xc   :  { %293 = dma.done.wait [#allocation5], 16 }
   0xd   :  { %294 = vsyncadd [#allocation5], 4294967280 }
   0xe   :  { %14 = sfence }
   0xf   :  { %15 = vsyncpa [#allocation8], 0  ;;  %vm26_vm0 = vcmask 7168   ;;  %v302_v0 = vmov -inf   ;;  %v303_v1 = vmov 0.0   ;;  %s337_s0 = smov 0  }
  0x10   :  { %27 = vst.msk [vmem:[#allocation3] sm:$0xff] %vm26_vm0, %v302_v0  ;;  %28 = vst.msk [vmem:[#allocation4] sm:$0xff] %vm26_vm0, %v303_v1 }
  0x11 LB: > { %s216_s20 = sshll.u32 %s299_s0, 2  ;;  %vm59_vm1 = vcmask 253952   ;;  %s58_s14 = scalar_lea.vmem [#allocation2], %s299_s0  ;;  %s299_s0 = sphi %s337_s0, %s35_s0  }
  0x12   : > { %s38_s21 = sld [smem:[#allocation6 + %s216_s20]]  ;;  %s42_s22 = sadd.s32 1, %s216_s20 }
  0x13   : > { %s43_s23 = sld [smem:[#allocation6 + %s42_s22]]  ;;  %s47_s24 = sadd.s32 2, %s216_s20 }
  0x14   : > { %s48_s25 = sld [smem:[#allocation6 + %s47_s24]]  ;;  %s52_s26 = sadd.s32 3, %s216_s20 }
  0x15   : > { %s53_s27 = sld [smem:[#allocation6 + %s52_s26]]  ;;  %s35_s0 = sadd.s32 1, %s299_s0  }
  0x16   : > { %p32_p5 = scmp.ge.s32.totalorder %s35_s0, 8  }
  0x17   :  { %224 = vmatprep.subr.mxu0 (%p32_p5), %v303_v1  ;;  %v65_v10 = vld [vmem:[%s376_s2 + $0x18] sm:$0xff] (%p32_p5)  ;;  %v64_v11 = vld [vmem:[%s376_s2 + $0x10] sm:$0xff] (%p32_p5)  ;;  %vm304_vm2 = vmmov (%p32_p5), 0   ;;  %v63_v12 = vld [vmem:[%s376_s2 + $0x8] sm:$0xff] (%p32_p5)  ;;  %vm73_vm3 = vcmask (%p32_p5), 261120   ;;  %v305_v19 = vmov (%p32_p5), 0  }
  0x18   : > { %s39_s30 = scalar_lea.vmem %s375_s1, %s38_s21  ;;  %225 = vmatpush3.msra.mxu0 (%p32_p5), %v65_v10  ;;  %232 = vmatprep.mubr.msk.f32.mxu0 (%p32_p5), %vm304_vm2, %v303_v1  ;;  %v62_v13 = vld [vmem:[%s376_s2] sm:$0xff] (%p32_p5)  ;;  %v147_v20 = vld [vmem:[#allocation3] sm:$0xff] (%p32_p5)  ;;  %v151_v30 = vld [vmem:[#allocation4] sm:$0xff] (%p32_p5)  ;;  %s306_s2 = smov (%p32_p5), [#allocation7]  }
  0x19   : > { %v40_v2 = vld [vmem:[%s39_s30] sm:$0x1]  ;;  %s44_s7 = scalar_lea.vmem %s375_s1, %s43_s23  ;;  %226 = vmatprep.subr.mxu0 (%p32_p5), %v303_v1  ;;  %249 = vset.pattern.permute.xlu0 (%p32_p5), %v305_v19 }
  0x1a   : > { %v45_v3 = vld [vmem:[%s44_s7] sm:$0x1]  ;;  %s49_s10 = scalar_lea.vmem %s375_s1, %s48_s25  ;;  %227 = vmatpush3.msra.mxu0 (%p32_p5), %v64_v11  ;;  %250 = vset.pattern.permute.xlu1 (%p32_p5), %v305_v19 }
  0x1b   : > { %v46_v4 = vadd.f32 %v45_v3, %v40_v2  ;;  %v50_v5 = vld [vmem:[%s49_s10] sm:$0x1]  ;;  %s54_s13 = scalar_lea.vmem %s375_s1, %s53_s27  ;;  %228 = vmatprep.subr.mxu0 (%p32_p5), %v303_v1 }
  0x1c   : > { %v55_v6 = vld [vmem:[%s54_s13] sm:$0x1]  ;;  %229 = vmatpush3.msra.mxu0 (%p32_p5), %v63_v12 }
  0x1d   : > { %v51_v7 = vadd.f32 %v50_v5, %v46_v4  ;;  %230 = vmatprep.subr.mxu0 (%p32_p5), %v303_v1  ;;  %v217_v15 = vld [vmem:[%s377_s3] ss:$0 sm:$0xff] (%p32_p5)  ;;  %s197_s3 = sshll.u32 (%p32_p5), %s306_s2, 4  ;;  %s198_s3 = int_to_ptr.vmem [resolvable:$true] %s197_s3 }
  0x1e   :  { %231 = vmatpush3.msra.mxu0 (%p32_p5), %v62_v13  ;;  %s269_s23 = scalar_lea.vmem (%p32_p5), %s198_s3, 128  ;;  %p274_p7 = scmp.lt.s32.totalorder (%p32_p5), %s198_s3, %s198_s3 }
  0x1f   : > { %v56_v8 = vadd.f32 %v55_v6, %v51_v7  ;;  %34 = sbr.rel (!%p32_p5) target bundleno = 17 (0x11), region = 53  ;;  %p270_p6 = scmp.ne.s32.totalorder (%p32_p5), %s198_s3, %s269_s23 }
  0x20   :  { %p275_p8 = scmp.lt.s32.totalorder (%p32_p5), %s269_s23, %s269_s23 }
  0x21   : > { %v57_v9 = vmul.f32 0.25, %v56_v8 }
  0x22   :  { %p276_p9 = por (%p32_p5), %p275_p8, %p274_p7 }
  0x23   : > { %60 = vst.msk [vmem:[%s58_s14] sm:$0x1] %vm59_vm1, %v57_v9 }
  0x24   :  { %p277_p10 = pnand %p276_p9, %p270_p6 }
  0x2a   :  { %v61_v14 = vld [vmem:[#allocation2] sm:$0xff] }
  0x2b   :  { %233 = vmatmul.mubr.msk.f32.vlgmr.msra.gmra.mxu0 %vm73_vm3, %v61_v14 }
  0xeb   :  { %v143_v16 = vpop.f32.mrf.mxu0 }
  0xec   :  { %v144_v17 = vadd.f32 %v217_v15, %v143_v16 }
  0xed   :  { %v234_v18 = vpop.f32.mrf.mxu0 }
  0xee   :  { %148 = vmax.xlane.f32.xlu0 %v144_v17 }
 0x177   :  { %v149_v21 = vpop.xlane.xlu0 %148 }
 0x178   :  { %v150_v22 = vmax.f32 %v147_v20, %v149_v21 }
 0x17a   :  { %v152_v23 = vsub.f32 %v147_v20, %v150_v22  ;;  %169 = vst.msk [vmem:[#allocation3] sm:$0xff] %vm26_vm0, %v150_v22  ;;  %158 = vperm.xlu0 %249, %v150_v22  }
 0x17c   :  { %v153_v28 = vmul.f32 1.442695, %v152_v23 }
 0x181   :  { %v178_v37 = vld [vmem:[#allocation3] sm:$0xff] }
 0x1f5   :  { %v159_v24 = vpop.permute.xlu0 %158 }
 0x1f6   :  { %v161_v25 = vsub.f32 %v144_v17, %v159_v24 }
 0x1f8   :  { %v162_v26 = vmul.f32 1.442695, %v161_v25 }
 0x1fa   :  { %251 = vpow2.f32 %v162_v26 }
 0x1fb   :  { %253 = vpow2.f32 %v153_v28 }
 0x207   :  { %v252_v27 = vpop.eup %251 }
 0x208   :  { %164 = vadd.xlane.f32.xlu1 %v252_v27  ;;  %v254_v29 = vpop.eup %253 }
 0x209   :  { %v155_v31 = vmul.f32 %v254_v29, %v151_v30 }
 0x291   :  { %v165_v32 = vpop.xlane.xlu1 %164 }
 0x292   :  { %v166_v33 = vadd.f32 %v165_v32, %v155_v31 }
 0x294   :  { %168 = vst.msk [vmem:[#allocation4] sm:$0xff] %vm26_vm0, %v166_v33 }
 0x29b   :  { %v179_v34 = vld [vmem:[#allocation4] sm:$0xff] }
 0x29c   :  { %255 = vlog2.f32 %v179_v34 }
 0x2a9   :  { %v256_v35 = vpop.eup %255 }
 0x2aa   :  { %v181_v36 = vmul.f32 0.6931472, %v256_v35 }
 0x2ac   :  { %v182_v38 = vadd.f32 %v181_v36, %v178_v37 }
 0x2ae   :  { %186 = vperm.xlu1 %250, %v182_v38  }
 0x329   :  { %v187_v39 = vpop.permute.xlu1 %186 }
 0x32a   :  { %v189_v40 = vsub.f32 %v144_v17, %v187_v39 }
 0x32c   :  { %190 = vst [vmem:[#allocation7] sm:$0xff] %v189_v40 }
 0x32d   :  { %280 = shalt.err (!%p277_p10)
}
 0x32e   :  { %200 = dma.vmem_to_hbm [thread:$0]  %s198_s3, 128, %s378_s4, [#allocation8]  }
 0x32f   :  { %295 = dma.done.wait [#allocation8], 128  }
 0x330   :  { %296 = vsyncadd [#allocation8], 4294967168 }
 0x331   :  { %204 = vsyncpa [#allocation8], 1 }

</bundles_post_ra>
